<compile_context>
chip_gen: v7x
topology: tpu7x:2x2x1
jax: 0.10.0
libtpu: 0.0.40
codegen_flags: <defaults>
</compile_context>

<pallas_src>
import functools
import math
import numpy as np
import jax
import jax.numpy as jnp
from jax.experimental import pallas as pl
from jax.experimental.pallas import tpu as pltpu

CIN_T, COUT_T, K_T, S_T, G = 6, 3, 3, 2, 3      # grouped transposed conv
CIN_C, COUT_C, K_C, S_C = 3, 3, 3, 2            # regular conv

H, W = 4, 3                                     # fixed spatial size from the spec
OH1, OW1 = (H - 1) * S_T + K_T, (W - 1) * S_T + K_T          # 9, 7
OH2, OW2 = (OH1 - K_C) // S_C + 1, (OW1 - K_C) // S_C + 1    # 4, 3

D_IN = CIN_T * H * W          # 72
D_MID = COUT_T * OH1 * OW1    # 189
D_OUT = COUT_C * OH2 * OW2    # 36

D_IN_PAD, D_MID_PAD, D_OUT_PAD = 128, 256, 128
BIAS1_ROW = D_IN              # homogeneous-1 column index in x_row
BIAS2_LANE = D_MID            # padded v10 lane that carries the constant for b2
BIAS2_SCALE = 16.0            # power of two; survives the GELU chain exactly


# ---------------------------------------------------------------------------
# Pallas kernel: the entire forward pass, fused, grid=()
# ---------------------------------------------------------------------------
def _fused_kernel(x_ref, a1_ref, a2_ref, o_ref):
    # grouped ConvTranspose2d (+bias via homogeneous column) as one lane-dense matmul
    v1 = jnp.dot(x_ref[...], a1_ref[...], preferred_element_type=jnp.float32)
    # tanh-GELU chain + ReLU (VPU muls + EUP tanh; stays in registers/VMEM)
    v2 = v1 * 0.5
    v3 = v1 * v1 * v1
    v4 = v3 * 0.044715
    v5 = v1 + v4
    v6 = v5 * 0.7978845608028654
    v7 = jnp.tanh(v6)
    v8 = v7 + 1.0
    v9 = v2 * v8
    v10 = jnp.maximum(v9, 0.0)                  # ReLU, kept in VMEM (no HBM trip)
    # Conv2d(3,3,3,stride=2) (+bias via the 16.0 injection lane) as one matmul
    o_ref[...] = jnp.dot(v10, a2_ref[...], preferred_element_type=jnp.float32)


# ---------------------------------------------------------------------------
# One-time (host, numpy) folding of the conv weights into padded dense operators.
# Shape-specialized to the fixed input spatial size of the spec (H=4, W=3).
# ---------------------------------------------------------------------------
def build_operators(wt, bt, wc, bc):
    wt = np.asarray(wt, np.float32)
    bt = np.asarray(bt, np.float32)
    wc = np.asarray(wc, np.float32)
    bc = np.asarray(bc, np.float32)

    cin_pg, cout_pg = CIN_T // G, COUT_T // G

    # ---- grouped transposed conv:  v1[co, 2ih+kh, 2iw+kw] += x[ci,ih,iw]*wt[ci,cog,kh,kw]
    a1 = np.zeros((D_IN_PAD, D_MID_PAD), np.float32)
    for ci in range(CIN_T):
        g = ci // cin_pg
        for cog in range(cout_pg):
            co = g * cout_pg + cog
            for ih in range(H):
                for iw in range(W):
                    fin = (ci * H + ih) * W + iw
                    for kh in range(K_T):
                        for kw in range(K_T):
                            oh = ih * S_T + kh
                            ow = iw * S_T + kw
                            fout = (co * OH1 + oh) * OW1 + ow
                            a1[fin, fout] += wt[ci, cog, kh, kw]
    # bias of the transposed conv folded into the homogeneous row
    a1[BIAS1_ROW, :D_MID] = np.repeat(bt, OH1 * OW1)
    # bias-2 injection lane: v1[:, BIAS2_LANE] = 16.0 -> survives GELU/ReLU as 16.0
    a1[BIAS1_ROW, BIAS2_LANE] = BIAS2_SCALE

    # ---- regular conv:  v11[co, o_h, o_w] += v10[ci, 2o_h+kh, 2o_w+kw]*wc[co,ci,kh,kw]
    a2 = np.zeros((D_MID_PAD, D_OUT_PAD), np.float32)
    for co in range(COUT_C):
        for ci in range(CIN_C):
            for o_h in range(OH2):
                for o_w in range(OW2):
                    fout = (co * OH2 + o_h) * OW2 + o_w
                    for kh in range(K_C):
                        for kw in range(K_C):
                            fin = (ci * OH1 + (o_h * S_C + kh)) * OW1 + (o_w * S_C + kw)
                            a2[fin, fout] += wc[co, ci, kh, kw]
    # conv bias folded through the injection lane: 16 * (b2/16) == b2 exactly
    a2[BIAS2_LANE, :D_OUT] = np.repeat(bc, OH2 * OW2) / BIAS2_SCALE

    return jnp.asarray(a1), jnp.asarray(a2)


# ---------------------------------------------------------------------------
# Jitted forward: pad -> one pallas_call -> slice + reshape.
# ---------------------------------------------------------------------------
@jax.jit
def model_forward(x, a1, a2):
    assert x.shape[1:] == (CIN_T, H, W), (
        f"operators are shape-specialized to {(CIN_T, H, W)}, got {x.shape[1:]}")
    n = x.shape[0]
    n_pad = -(-n // 8) * 8                                   # sublane-aligned batch
    x_row = x.reshape(n, D_IN).astype(jnp.float32)
    x_aug = jnp.concatenate([x_row, jnp.ones((n, 1), jnp.float32)], axis=1)  # bias col
    x_padded = jnp.zeros((n_pad, D_IN_PAD), jnp.float32).at[:n, :D_IN + 1].set(x_aug)

    cost = pl.CostEstimate(
        flops=2 * n_pad * (D_IN_PAD * D_MID_PAD + D_MID_PAD * D_OUT_PAD),
        transcendentals=n_pad * D_MID_PAD,
        bytes_accessed=4 * (n_pad * D_IN_PAD + D_IN_PAD * D_MID_PAD
                            + D_MID_PAD * D_OUT_PAD + n_pad * D_OUT_PAD),
    )
    out_row = pl.pallas_call(
        _fused_kernel,
        out_shape=jax.ShapeDtypeStruct((n_pad, D_OUT_PAD), jnp.float32),
        in_specs=[pl.BlockSpec(memory_space=pltpu.MemorySpace.VMEM)] * 3,
        out_specs=pl.BlockSpec(memory_space=pltpu.MemorySpace.VMEM),
        cost_estimate=cost,
    )(x_padded, a1, a2)
    return out_row[:n, :D_OUT].reshape(n, COUT_C, OH2, OW2)


# ---------------------------------------------------------------------------
# Independent (numpy loop) reference for verification
# ---------------------------------------------------------------------------
def reference_forward(x, wt, bt, wc, bc):
    x, wt, bt, wc, bc = [np.asarray(a, np.float64) for a in (x, wt, bt, wc, bc)]
    n, cin, h, w = x.shape
    cin_pg, cout_pg = CIN_T // G, COUT_T // G
    oh1, ow1 = (h - 1) * S_T + K_T, (w - 1) * S_T + K_T
    v1 = np.zeros((n, COUT_T, oh1, ow1))
    for b in range(n):
        for g in range(G):
            for cig in range(cin_pg):
                ci = g * cin_pg + cig
                for cog in range(cout_pg):
                    co = g * cout_pg + cog
                    for ih in range(h):
                        for iw in range(w):
                            for kh in range(K_T):
                                for kw in range(K_T):
                                    v1[b, co, ih * S_T + kh, iw * S_T + kw] += (
                                        x[b, ci, ih, iw] * wt[ci, cog, kh, kw]
                                    )
    v1 += bt.reshape(1, COUT_T, 1, 1)
    v2 = v1 * 0.5
    v5 = v1 + (v1 ** 3) * 0.044715
    v9 = v2 * (np.tanh(v5 * 0.7978845608028654) + 1.0)
    v10 = np.maximum(v9, 0.0)
    oh2, ow2 = (oh1 - K_C) // S_C + 1, (ow1 - K_C) // S_C + 1
    v11 = np.zeros((n, COUT_C, oh2, ow2))
    for b in range(n):
        for co in range(COUT_C):
            for oh in range(oh2):
                for ow in range(ow2):
                    acc = bc[co]
                    for ci in range(CIN_C):
                        for kh in range(K_C):
                            for kw in range(K_C):
                                acc += v10[b, ci, oh * S_C + kh, ow * S_C + kw] * wc[co, ci, kh, kw]
                    v11[b, co, oh, ow] = acc
    return v11


if __name__ == "__main__":
    key = jax.random.PRNGKey(0)
    kx, kwt, kbt, kwc, kbc = jax.random.split(key, 5)

    x = jax.random.normal(kx, (1, CIN_T, H, W), jnp.float32)

    # deterministic PyTorch-style uniform(-1/sqrt(fan_in), 1/sqrt(fan_in)) init
    bound_t = 1.0 / math.sqrt((CIN_T // G) * K_T * K_T)
    wt = jax.random.uniform(kwt, (CIN_T, COUT_T // G, K_T, K_T), jnp.float32, -bound_t, bound_t)
    bt = jax.random.uniform(kbt, (COUT_T,), jnp.float32, -bound_t, bound_t)

    bound_c = 1.0 / math.sqrt(CIN_C * K_C * K_C)
    wc = jax.random.uniform(kwc, (COUT_C, CIN_C, K_C, K_C), jnp.float32, -bound_c, bound_c)
    bc = jax.random.uniform(kbc, (COUT_C,), jnp.float32, -bound_c, bound_c)

    # one-time weight folding + padding (hoisted out of the jitted per-call path)
    a1, a2 = build_operators(wt, bt, wc, bc)

    out = model_forward(x, a1, a2)
    out = jax.block_until_ready(out)

    ref = reference_forward(x, wt, bt, wc, bc)
    assert out.shape == (1, COUT_C, OH2, OW2), out.shape
    np.testing.assert_allclose(np.asarray(out), ref, atol=2e-4, rtol=2e-4)
    print("KERNEL_OK")
</pallas_src>

<mosaic_0001>
module attributes {stable_mosaic.version = 11 : i64} {
  func.func @_fused_kernel(%arg0: memref<8x128xf32, #tpu.memory_space<vmem>>, %arg1: memref<128x256xf32, #tpu.memory_space<vmem>>, %arg2: memref<256x128xf32, #tpu.memory_space<vmem>>, %arg3: memref<8x128xf32, #tpu.memory_space<vmem>>) attributes {dimension_semantics = [], scalar_prefetch = 0 : i64, scratch_operands = 0 : i64, tpu.core_type = #tpu.core_type<tc>} {
    %c0 = arith.constant 0 : index
    %c0_0 = arith.constant 0 : index
    %0 = vector.load %arg0[%c0, %c0_0] : memref<8x128xf32, #tpu.memory_space<vmem>>, vector<8x128xf32>
    %c0_1 = arith.constant 0 : index
    %c0_2 = arith.constant 0 : index
    %1 = vector.load %arg1[%c0_1, %c0_2] : memref<128x256xf32, #tpu.memory_space<vmem>>, vector<128x256xf32>
    %cst = arith.constant dense<0.000000e+00> : vector<8x256xf32>
    %2 = tpu.matmul %0, %1, %cst {dimension_numbers = #tpu.dot_dimension_numbers<[1], [0], [0], [1], [0, 0, 1, 1], [], []>} : vector<8x128xf32>, vector<128x256xf32>, vector<8x256xf32> -> vector<8x256xf32>
    %cst_3 = arith.constant 5.000000e-01 : f32
    %3 = vector.broadcast %cst_3 : f32 to vector<8x256xf32>
    %4 = arith.mulf %2, %3 : vector<8x256xf32>
    %5 = arith.mulf %2, %2 : vector<8x256xf32>
    %6 = arith.mulf %5, %2 : vector<8x256xf32>
    %cst_4 = arith.constant 4.471500e-02 : f32
    %7 = vector.broadcast %cst_4 : f32 to vector<8x256xf32>
    %8 = arith.mulf %6, %7 : vector<8x256xf32>
    %9 = arith.addf %2, %8 : vector<8x256xf32>
    %cst_5 = arith.constant 0.797884583 : f32
    %10 = vector.broadcast %cst_5 : f32 to vector<8x256xf32>
    %11 = arith.mulf %9, %10 : vector<8x256xf32>
    %12 = math.tanh %11 : vector<8x256xf32>
    %cst_6 = arith.constant 1.000000e+00 : f32
    %13 = vector.broadcast %cst_6 : f32 to vector<8x256xf32>
    %14 = arith.addf %12, %13 : vector<8x256xf32>
    %15 = arith.mulf %4, %14 : vector<8x256xf32>
    %cst_7 = arith.constant 0.000000e+00 : f32
    %16 = vector.broadcast %cst_7 : f32 to vector<8x256xf32>
    %17 = arith.maximumf %15, %16 : vector<8x256xf32>
    %c0_8 = arith.constant 0 : index
    %c0_9 = arith.constant 0 : index
    %18 = vector.load %arg2[%c0_8, %c0_9] : memref<256x128xf32, #tpu.memory_space<vmem>>, vector<256x128xf32>
    %cst_10 = arith.constant dense<0.000000e+00> : vector<8x128xf32>
    %19 = tpu.matmul %17, %18, %cst_10 {dimension_numbers = #tpu.dot_dimension_numbers<[1], [0], [0], [1], [0, 0, 1, 1], [], []>} : vector<8x256xf32>, vector<256x128xf32>, vector<8x128xf32> -> vector<8x128xf32>
    %c0_11 = arith.constant 0 : index
    %c0_12 = arith.constant 0 : index
    %20 = vector.load %arg3[%c0_11, %c0_12] : memref<8x128xf32, #tpu.memory_space<vmem>>, vector<8x128xf32>
    tpu.vector_store %arg3[%c0_11, %c0_12], %19 {strides = array<i32>} : memref<8x128xf32, #tpu.memory_space<vmem>>, vector<8x128xf32>,
    return
  }
}

</mosaic_0001>

<bundles_post_ra>
// kernel: model_forward.1
= control target key start
LH: loop header
LB: loop body
LE: loop exit
PB: predicated region body
PF: predicated region fallthrough
CT: control target
= control target key end

     0   :  { %8 = vsyncpa [#allocation3], 0  ;;  %s490_s0 = inlined_call_operand.vmem [shape: f32[8,128], index: 0, kind: input, shape index: {}]   ;;  %s491_s1 = inlined_call_operand.hbm [shape: f32[128,256], index: 1, kind: input, shape index: {}]   ;;  %s492_s2 = inlined_call_operand.hbm [shape: f32[256,128], index: 2, kind: input, shape index: {}]   ;;  %s493_s3 = inlined_call_operand.vmem [shape: f32[8,128], index: 3, kind: output, shape index: {}]  }
   0x1   :  { %9 = vsyncpa [#allocation5], 0  ;;  %s433_s12 = smov [#allocation2]   ;;  %s385_s16 = scalar_lea.hbm %s491_s1, 4096 }
   0x2   :  { %s17_s13 = sshll.u32 %s433_s12, 4  ;;  %p386_p0 = scmp.ne.s32.totalorder %s491_s1, %s385_s16  ;;  %s18_s13 = int_to_ptr.vmem [resolvable:$true] %s17_s13 }
   0x3   :  { %p389_p1 = scmp.lt.u32.totalorder %s385_s16, %s491_s1 }
   0x5   :  { %p391_p2 = pnand %p389_p1, %p386_p0 }
   0x7   :  { %394 = shalt.err (!%p391_p2)
}
   0x8   :  { %s395_s21 = scalar_lea.vmem %s18_s13, 4096  ;;  %p400_p4 = scmp.lt.s32.totalorder %s18_s13, %s18_s13 }
   0x9   :  { %p396_p3 = scmp.ne.s32.totalorder %s18_s13, %s395_s21  ;;  %p401_p5 = scmp.lt.s32.totalorder %s395_s21, %s395_s21 }
   0xb   :  { %p402_p6 = por %p401_p5, %p400_p4 }
   0xd   :  { %p403_p7 = pnand %p402_p6, %p396_p3 }
   0xf   :  { %406 = shalt.err (!%p403_p7)
}
  0x10   :  { %s434_s22 = smov 256   ;;  %s435_s23 = smov 16  }
  0x11   :  { %23 = dma.hbm_to_vmem [thread:$0]  %s491_s1, 4096, %s18_s13, [#allocation3], %s434_s22, %s434_s22, %s435_s23  }
  0x12   :  { %s436_s26 = smov [#allocation4]   ;;  %s407_s30 = scalar_lea.hbm %s492_s2, 4096 }
  0x13   :  { %s29_s27 = sshll.u32 %s436_s26, 4  ;;  %p408_p8 = scmp.ne.s32.totalorder %s492_s2, %s407_s30  ;;  %s30_s27 = int_to_ptr.vmem [resolvable:$true] %s29_s27 }
  0x14   :  { %p411_p9 = scmp.lt.u32.totalorder %s407_s30, %s492_s2 }
  0x16   :  { %p413_p10 = pnand %p411_p9, %p408_p8 }
  0x18   :  { %416 = shalt.err (!%p413_p10)
}
  0x19   :  { %s417_s8 = scalar_lea.vmem %s30_s27, 4096  ;;  %p422_p12 = scmp.lt.s32.totalorder %s30_s27, %s30_s27 }
  0x1a   :  { %p418_p11 = scmp.ne.s32.totalorder %s30_s27, %s417_s8  ;;  %p423_p13 = scmp.lt.s32.totalorder %s417_s8, %s417_s8 }
  0x1c   :  { %p424_p0 = por %p423_p13, %p422_p12 }
  0x1e   :  { %p425_p1 = pnand %p424_p0, %p418_p11 }
  0x20   :  { %428 = shalt.err (!%p425_p1)
}
  0x21   :  { %s437_s1 = smov 128   ;;  %s438_s9 = smov 8  }
  0x22   :  { %35 = dma.hbm_to_vmem [thread:$0]  %s492_s2, 4096, %s30_s27, [#allocation5], %s437_s1, %s437_s1, %s438_s9  }
  0x23   :  { %429 = dma.done.wait [#allocation3], 4096  }
  0x24   :  { %430 = vsyncadd [#allocation3], 4294963200 }
  0x25   :  { %431 = dma.done.wait [#allocation5], 4096  }
  0x26   :  { %432 = vsyncadd [#allocation5], 4294963200  ;;  %v439_v0 = vmov 0.0   ;;  %v44_v1 = vld [vmem:[#allocation2 + $0x8] sm:$0xff]  ;;  %v46_v2 = vld [vmem:[#allocation2 + $0x18] sm:$0xff] }
  0x27   :  { %139 = vmatprep.mubr.f32.mxu0 %v439_v0  ;;  %v43_v3 = vld [vmem:[#allocation2] sm:$0xff]  ;;  %v310_v4 = vpack.c.bf16 %v46_v2, %v44_v1  ;;  %v45_v5 = vld [vmem:[#allocation2 + $0x10] sm:$0xff]  ;;  %v48_v6 = vld [vmem:[#allocation2 + $0x28] sm:$0xff] }
  0x28   :  { %v50_v7 = vld [vmem:[#allocation2 + $0x38] sm:$0xff]  ;;  %v312_v8 = vpack.c.bf16 %v45_v5, %v43_v3  ;;  %v47_v10 = vld [vmem:[#allocation2 + $0x20] sm:$0xff]  ;;  %v49_v11 = vld [vmem:[#allocation2 + $0x30] sm:$0xff] }
  0x29   :  { %v314_v9 = vpack.c.bf16 %v50_v7, %v48_v6  ;;  %v52_v12 = vld [vmem:[#allocation2 + $0x48] sm:$0xff]  ;;  %311 = vmatprep.subr.bf16.mxu0 %v310_v4  ;;  %v54_v13 = vld [vmem:[#allocation2 + $0x58] sm:$0xff]  ;;  %v316_v14 = vpack.c.bf16 %v49_v11, %v47_v10  ;;  %v51_v16 = vld [vmem:[#allocation2 + $0x40] sm:$0xff] }
  0x2a   :  { %313 = vmatpush1.bf16.msra.mxu0 %v312_v8  ;;  %v318_v15 = vpack.c.bf16 %v54_v13, %v52_v12  ;;  %v53_v17 = vld [vmem:[#allocation2 + $0x50] sm:$0xff]  ;;  %v56_v18 = vld [vmem:[#allocation2 + $0x68] sm:$0xff]  ;;  %v58_v19 = vld [vmem:[#allocation2 + $0x78] sm:$0xff] }
  0x2b   :  { %315 = vmatprep.subr.bf16.mxu0 %v314_v9  ;;  %v320_v20 = vpack.c.bf16 %v53_v17, %v51_v16  ;;  %v322_v21 = vpack.c.bf16 %v58_v19, %v56_v18  ;;  %v55_v22 = vld [vmem:[#allocation2 + $0x60] sm:$0xff]  ;;  %v57_v23 = vld [vmem:[#allocation2 + $0x70] sm:$0xff]  ;;  %v60_v24 = vld [vmem:[#allocation2 + $0x88] sm:$0xff] }
  0x2c   :  { %v62_v25 = vld [vmem:[#allocation2 + $0x98] sm:$0xff]  ;;  %v182_v26 = vld [vmem:[#allocation4 + $0x80] sm:$0xff]  ;;  %v183_v27 = vld [vmem:[#allocation4 + $0x88] sm:$0xff]  ;;  %v324_v29 = vpack.c.bf16 %v57_v23, %v55_v22 }
  0x2d   :  { %v166_v28 = vld [vmem:[#allocation4] sm:$0xff]  ;;  %v342_v30 = vpack.c.bf16 %v183_v27, %v182_v26  ;;  %v167_v31 = vld [vmem:[#allocation4 + $0x8] sm:$0xff]  ;;  %v326_v32 = vpack.c.bf16 %v62_v25, %v60_v24  ;;  %v61_v34 = vld [vmem:[#allocation2 + $0x90] sm:$0xff] }
  0x2e   :  { %317 = vmatpush1.bf16.msra.mxu0 %v316_v14  ;;  %v59_v33 = vld [vmem:[#allocation2 + $0x80] sm:$0xff]  ;;  %v344_v35 = vpack.c.bf16 %v167_v31, %v166_v28  ;;  %v64_v36 = vld [vmem:[#allocation2 + $0xa8] sm:$0xff]  ;;  %v66_v37 = vld [vmem:[#allocation2 + $0xb8] sm:$0xff] }
  0x2f   :  { %319 = vmatprep.subr.bf16.mxu0 %v318_v15  ;;  %343 = vmatprep.subr.bf16.mxu1 %v342_v30  ;;  %v328_v38 = vpack.c.bf16 %v61_v34, %v59_v33  ;;  %v330_v39 = vpack.c.bf16 %v66_v37, %v64_v36  ;;  %v63_v40 = vld [vmem:[#allocation2 + $0xa0] sm:$0xff]  ;;  %v65_v41 = vld [vmem:[#allocation2 + $0xb0] sm:$0xff]  ;;  %v68_v42 = vld [vmem:[#allocation2 + $0xc8] sm:$0xff] }
  0x30   :  { %345 = vmatpush3.bf16.msra.mxu1 %v344_v35  ;;  %v70_v43 = vld [vmem:[#allocation2 + $0xd8] sm:$0xff]  ;;  %v332_v44 = vpack.c.bf16 %v65_v41, %v63_v40  ;;  %v67_v46 = vld [vmem:[#allocation2 + $0xc0] sm:$0xff]  ;;  %v69_v47 = vld [vmem:[#allocation2 + $0xd0] sm:$0xff] }
  0x31   :  { %v334_v45 = vpack.c.bf16 %v70_v43, %v68_v42  ;;  %v72_v48 = vld [vmem:[#allocation2 + $0xe8] sm:$0xff]  ;;  %v74_v49 = vld [vmem:[#allocation2 + $0xf8] sm:$0xff]  ;;  %v336_v50 = vpack.c.bf16 %v69_v47, %v67_v46  ;;  %v71_v52 = vld [vmem:[#allocation2 + $0xe0] sm:$0xff] }
  0x32   :  { %321 = vmatpush1.bf16.msra.mxu0 %v320_v20  ;;  %v338_v51 = vpack.c.bf16 %v74_v49, %v72_v48  ;;  %v73_v53 = vld [vmem:[#allocation2 + $0xf0] sm:$0xff]  ;;  %v42_v55 = vld [vmem:[%s490_s0] sm:$0xff]  ;;  %v185_v57 = vld [vmem:[#allocation4 + $0x98] sm:$0xff] }
  0x33   :  { %323 = vmatprep.subr.bf16.mxu0 %v322_v21  ;;  %v340_v54 = vpack.c.bf16 %v73_v53, %v71_v52  ;;  %v184_v56 = vld [vmem:[#allocation4 + $0x90] sm:$0xff]  ;;  %v169_v60 = vld [vmem:[#allocation4 + $0x18] sm:$0xff]  ;;  %v186_v62 = vld [vmem:[#allocation4 + $0xa0] sm:$0xff] }
  0x34   :  { %v346_v58 = vpack.c.bf16 %v185_v57, %v184_v56  ;;  %v168_v59 = vld [vmem:[#allocation4 + $0x10] sm:$0xff]  ;;  %v187_v63 = vld [vmem:[#allocation4 + $0xa8] sm:$0xff]  ;;  %v170_v1 = vld [vmem:[#allocation4 + $0x20] sm:$0xff] }
  0x35   :  { %v348_v61 = vpack.c.bf16 %v169_v60, %v168_v59  ;;  %v350_v0 = vpack.c.bf16 %v187_v63, %v186_v62  ;;  %v171_v2 = vld [vmem:[#allocation4 + $0x28] sm:$0xff]  ;;  %v188_v4 = vld [vmem:[#allocation4 + $0xb0] sm:$0xff]  ;;  %v189_v5 = vld [vmem:[#allocation4 + $0xb8] sm:$0xff] }
  0x36   :  { %325 = vmatpush1.bf16.msra.mxu0 %v324_v29  ;;  %347 = vmatprep.subr.bf16.mxu1 %v346_v58  ;;  %v352_v3 = vpack.c.bf16 %v171_v2, %v170_v1  ;;  %v354_v6 = vpack.c.bf16 %v189_v5, %v188_v4  ;;  %v172_v7 = vld [vmem:[#allocation4 + $0x30] sm:$0xff]  ;;  %v173_v8 = vld [vmem:[#allocation4 + $0x38] sm:$0xff]  ;;  %v190_v10 = vld [vmem:[#allocation4 + $0xc0] sm:$0xff] }
  0x37   :  { %327 = vmatprep.subr.bf16.mxu0 %v326_v32  ;;  %349 = vmatpush3.bf16.msra.mxu1 %v348_v61  ;;  %v356_v9 = vpack.c.bf16 %v173_v8, %v172_v7  ;;  %v191_v11 = vld [vmem:[#allocation4 + $0xc8] sm:$0xff]  ;;  %v174_v13 = vld [vmem:[#allocation4 + $0x40] sm:$0xff]  ;;  %v192_v15 = vld [vmem:[#allocation4 + $0xd0] sm:$0xff] }
  0x38   :  { %351 = vmatprep.subr.bf16.mxu1 %v350_v0  ;;  %v358_v12 = vpack.c.bf16 %v191_v11, %v190_v10  ;;  %v175_v14 = vld [vmem:[#allocation4 + $0x48] sm:$0xff]  ;;  %v193_v17 = vld [vmem:[#allocation4 + $0xd8] sm:$0xff]  ;;  %v176_v18 = vld [vmem:[#allocation4 + $0x50] sm:$0xff] }
  0x39   :  { %v360_v16 = vpack.c.bf16 %v175_v14, %v174_v13  ;;  %v177_v19 = vld [vmem:[#allocation4 + $0x58] sm:$0xff]  ;;  %v362_v20 = vpack.c.bf16 %v193_v17, %v192_v15  ;;  %v194_v21 = vld [vmem:[#allocation4 + $0xe0] sm:$0xff]  ;;  %v195_v22 = vld [vmem:[#allocation4 + $0xe8] sm:$0xff] }
  0x3a   :  { %329 = vmatpush1.bf16.msra.mxu0 %v328_v38  ;;  %v364_v23 = vpack.c.bf16 %v177_v19, %v176_v18  ;;  %v366_v24 = vpack.c.bf16 %v195_v22, %v194_v21  ;;  %v178_v25 = vld [vmem:[#allocation4 + $0x60] sm:$0xff]  ;;  %v179_v26 = vld [vmem:[#allocation4 + $0x68] sm:$0xff]  ;;  %v196_v27 = vld [vmem:[#allocation4 + $0xf0] sm:$0xff] }
  0x3b   :  { %331 = vmatprep.subr.bf16.mxu0 %v330_v39  ;;  %353 = vmatpush3.bf16.msra.mxu1 %v352_v3  ;;  %v197_v28 = vld [vmem:[#allocation4 + $0xf8] sm:$0xff]  ;;  %v368_v29 = vpack.c.bf16 %v179_v26, %v178_v25  ;;  %v180_v31 = vld [vmem:[#allocation4 + $0x70] sm:$0xff] }
  0x3c   :  { %355 = vmatprep.subr.bf16.mxu1 %v354_v6  ;;  %v370_v30 = vpack.c.bf16 %v197_v28, %v196_v27  ;;  %v181_v32 = vld [vmem:[#allocation4 + $0x78] sm:$0xff] }
  0x3d   :  { %v372_v33 = vpack.c.bf16 %v181_v32, %v180_v31 }
  0x3e   :  { %333 = vmatpush1.bf16.msra.mxu0 %v332_v44 }
  0x3f   :  { %335 = vmatprep.subr.bf16.mxu0 %v334_v45  ;;  %357 = vmatpush3.bf16.msra.mxu1 %v356_v9 }
  0x40   :  { %359 = vmatprep.subr.bf16.mxu1 %v358_v12 }
  0x42   :  { %337 = vmatpush1.bf16.msra.mxu0 %v336_v50 }
  0x43   :  { %339 = vmatprep.subr.bf16.mxu0 %v338_v51  ;;  %361 = vmatpush3.bf16.msra.mxu1 %v360_v16 }
  0x44   :  { %363 = vmatprep.subr.bf16.mxu1 %v362_v20 }
  0x46   :  { %341 = vmatpush1.bf16.msra.mxu0 %v340_v54 }
  0x47   :  { %365 = vmatpush3.bf16.msra.mxu1 %v364_v23 }
  0x48   :  { %367 = vmatprep.subr.bf16.mxu1 %v366_v24 }
  0x49   :  { %140 = vmatmul.mubr.f32.vlgmr.msra.gmra.mrb[0].mxu0 %v42_v55 }
  0x4b   :  { %369 = vmatpush3.bf16.msra.mxu1 %v368_v29 }
  0x4c   :  { %371 = vmatprep.subr.bf16.mxu1 %v370_v30 }
  0x4f   :  { %373 = vmatpush3.bf16.msra.mxu1 %v372_v33 }
 0x11c   :  { %v141_v34 = vpop.f32.mrb[0].mxu0 }
 0x11d   :  { %v148_v35 = vmul.f32 %v141_v34, %v141_v34  ;;  %v143_v36 = vpop.f32.mrb[1].mxu0  ;;  %v146_v48 = vmul.f32 0.5, %v141_v34 }
 0x11e   :  { %v149_v37 = vmul.f32 %v143_v36, %v143_v36  ;;  %v147_v50 = vmul.f32 0.5, %v143_v36 }
 0x11f   :  { %v150_v38 = vmul.f32 %v148_v35, %v141_v34 }
 0x120   :  { %v151_v39 = vmul.f32 %v149_v37, %v143_v36 }
 0x121   :  { %v152_v40 = vmul.f32 0.044715, %v150_v38 }
 0x122   :  { %v153_v41 = vmul.f32 0.044715, %v151_v39 }
 0x123   :  { %v154_v42 = vadd.f32 %v152_v40, %v141_v34 }
 0x124   :  { %v155_v43 = vadd.f32 %v153_v41, %v143_v36 }
 0x125   :  { %v156_v44 = vmul.f32 0.7978846, %v154_v42 }
 0x126   :  { %v157_v45 = vmul.f32 0.7978846, %v155_v43 }
 0x127   :  { %381 = vtanh.f32 %v156_v44 }
 0x128   :  { %383 = vtanh.f32 %v157_v45 }
 0x131   :  { %v382_v46 = vpop.eup %381 }
 0x132   :  { %v384_v47 = vpop.eup %383  ;;  %v160_v49 = vadd.f32 1.0, %v382_v46 }
 0x133   :  { %v161_v51 = vadd.f32 1.0, %v384_v47 }
 0x134   :  { %v162_v52 = vmul.f32 %v160_v49, %v146_v48 }
 0x135   :  { %v163_v53 = vmul.f32 %v161_v51, %v147_v50 }
 0x136   :  { %v164_v55 = vmax.f32 %v162_v52, 0.0 }
 0x137   :  { %v165_v54 = vmax.f32 %v163_v53, 0.0 }
 0x139   :  { %262 = vmatprep.mubr.f32.mxu1 %v165_v54 }
 0x13a   :  { %263 = vmatmul.mubr.f32.vlgmr.msra.gmra.mrb[0].mxu1 %v164_v55 }
 0x20d   :  { %v307_v56 = vpop.f32.mrb[0].mxu1 }
 0x20e   :  { %v308_v57 = vpop.f32.mrb[1].mxu1 }
 0x20f   :  { %v309_v58 = vadd.f32 %v308_v57, %v307_v56 }
 0x211   :  { %268 = vst [vmem:[%s493_s3] sm:$0xff] %v309_v58 }
 0x212   :  { %273 = vsyncpa [#allocation3], 1 }
 0x213   :  { %274 = vsyncpa [#allocation5], 1 }

</bundles_post_ra>
